<compile_context>
chip_gen: v5e
topology: v5e:2x2
jax: 0.10.0
libtpu: 0.0.40
codegen_flags: <defaults>
</compile_context>

<pallas_src>
import functools

import jax
import jax.numpy as jnp
from jax.experimental import pallas as pl
from jax.experimental.pallas import tpu as pltpu

_LANE = 128
_SUBLANE = 8
# Max interior pixels handled per grid step (per batch element).  Dense f32
# in+out blocks, double-buffered: 2 * (3 + 4) * 131072 * 4 B ~= 7.3 MiB.
_MAX_TILE_PIXELS = 131072


def _conv1x1_tanh_kernel(x_ref, w_ref, b_ref, o_ref, *, c_in, c_out):
    # x_ref: (C_in, S_tile, 128)  VMEM   dense interior-pixel tiles
    # w_ref: (C_out, C_in)        SMEM   1x1 conv weights (scalar reads)
    # b_ref: (C_out,)             SMEM   bias (scalar reads)
    # o_ref: (C_out, S_tile, 128) VMEM
    xs = [x_ref[ci] for ci in range(c_in)]            # dense (S_tile, 128) tiles
    for co in range(c_out):
        y = xs[0] * w_ref[co, 0]
        for ci in range(1, c_in):
            y = y + xs[ci] * w_ref[co, ci]            # VPU FMAs (MXU would be <2% used)
        o_ref[co] = jnp.tanh(y + b_ref[co])           # EUP tanh, unmasked dense store


def _largest_tile(s_total, s_max):
    """Largest multiple-of-8 divisor of s_total that is <= s_max (s_total % 8 == 0)."""
    best = _SUBLANE
    cand = _SUBLANE
    limit = min(s_total, s_max)
    while cand <= limit:
        if s_total % cand == 0:
            best = cand
        cand += _SUBLANE
    return best


def conv1x1_pad1_tanh(x, weight, bias):
    """Conv2d(C_in->C_out, k=1, stride=1, padding=1) + tanh.

    x: (N, C_in, H, W) f32; weight: (C_out, C_in) f32; bias: (C_out,) f32.
    Returns (N, C_out, H+2, W+2) f32."""
    N, C_in, H, W = x.shape
    C_out = weight.shape[0]
    hw = H * W

    # Free (transpose-less) reshape of the interior pixels into a lane-dense
    # slab (N, C_in, S_total, 128).  Pad the pixel axis only if needed.
    tile_unit = _SUBLANE * _LANE
    hw_pad = ((hw + tile_unit - 1) // tile_unit) * tile_unit
    x_r = x.reshape(N, C_in, hw)
    if hw_pad != hw:
        x_r = jnp.pad(x_r, ((0, 0), (0, 0), (0, hw_pad - hw)))
    s_total = hw_pad // _LANE                          # multiple of 8
    x_slab = x_r.reshape(N, C_in, s_total, _LANE)

    s_tile = _largest_tile(s_total, _MAX_TILE_PIXELS // _LANE)
    grid = (N, s_total // s_tile)

    kernel = functools.partial(_conv1x1_tanh_kernel, c_in=C_in, c_out=C_out)

    out_slab = pl.pallas_call(
        kernel,
        out_shape=jax.ShapeDtypeStruct((N, C_out, s_total, _LANE), jnp.float32),
        grid_spec=pltpu.PrefetchScalarGridSpec(
            num_scalar_prefetch=0,
            grid=grid,
            in_specs=[
                # N dim squeezed out of the kernel ref; dense (8k,128) tail dims.
                pl.BlockSpec((None, C_in, s_tile, _LANE),
                             lambda n, s: (n, 0, s, 0)),
                pl.BlockSpec(memory_space=pltpu.MemorySpace.SMEM),   # weight
                pl.BlockSpec(memory_space=pltpu.MemorySpace.SMEM),   # bias
            ],
            out_specs=pl.BlockSpec((None, C_out, s_tile, _LANE),
                                   lambda n, s: (n, 0, s, 0)),
        ),
        compiler_params=pltpu.CompilerParams(
            dimension_semantics=("parallel", "parallel")),
    )(x_slab, weight, bias)

    # Back to NCHW for the interior: reshape only, no transpose.
    interior = out_slab.reshape(N, C_out, hw_pad)[:, :, :hw].reshape(N, C_out, H, W)

    # Border pixels of the padded 1x1 conv see only zeros -> output = tanh(bias).
    # TODO(synk): folding the border fill into the kernel would need non-lane-
    # dense (H+2, W+2) stores; at these sizes the single fused XLA pass is cheaper.
    border = jnp.tanh(bias).astype(jnp.float32)
    out = jnp.broadcast_to(border[None, :, None, None], (N, C_out, H + 2, W + 2))
    return out.at[:, :, 1:-1, 1:-1].set(interior)


def _reference(x, weight, bias):
    xp = jnp.pad(x, ((0, 0), (0, 0), (1, 1), (1, 1)))
    return jnp.tanh(jnp.einsum("oc,nchw->nohw", weight, xp)
                    + bias[None, :, None, None])


if __name__ == "__main__":
    key = jax.random.PRNGKey(0)
    kx, kw, kb, kx2 = jax.random.split(key, 4)

    C_in, C_out = 3, 4
    # Conv2d weight (4,3,1,1) squeezed to (4,3); bias (4,).
    weight = jax.random.normal(kw, (C_out, C_in), dtype=jnp.float32) * 0.1
    bias = jax.random.normal(kb, (C_out,), dtype=jnp.float32) * 0.1

    # Main case: batch=2 at the module's spatial size (H*W multiple of 1024 ->
    # no pixel padding, >=2 parallel grid steps).
    N, H, W = 2, 64, 64
    x = jax.random.normal(kx, (N, C_in, H, W), dtype=jnp.float32)
    out = conv1x1_pad1_tanh(x, weight, bias)
    jax.block_until_ready(out)
    ref = _reference(x, weight, bias)
    assert out.shape == (N, C_out, H + 2, W + 2), out.shape
    assert jnp.allclose(out, ref, atol=1e-5, rtol=1e-5)

    # Robustness case: H*W not a multiple of 8*128 (exercises the pad path).
    x2 = jax.random.normal(kx2, (1, C_in, 16, 16), dtype=jnp.float32)
    out2 = conv1x1_pad1_tanh(x2, weight, bias)
    jax.block_until_ready(out2)
    ref2 = _reference(x2, weight, bias)
    assert out2.shape == (1, C_out, 18, 18), out2.shape
    assert jnp.allclose(out2, ref2, atol=1e-5, rtol=1e-5)

    print("KERNEL_OK")
</pallas_src>

<mosaic_0001>
module attributes {stable_mosaic.version = 11 : i64} {
  func.func @_conv1x1_tanh_kernel(%arg0: i32, %arg1: i32, %arg2: memref<1x3x32x128xf32, #tpu.memory_space<vmem>>, %arg3: memref<4x3xf32, #tpu.memory_space<smem>>, %arg4: memref<4xf32, #tpu.memory_space<smem>>, %arg5: memref<1x4x32x128xf32, #tpu.memory_space<vmem>>) attributes {dimension_semantics = [#tpu.dimension_semantics<parallel>, #tpu.dimension_semantics<parallel>], iteration_bounds = array<i64: 2, 1>, scalar_prefetch = 0 : i64, scratch_operands = 0 : i64, tpu.core_type = #tpu.core_type<tc>, window_params = [{transform_indices = @transform_0, window_bounds = array<i64: 1, 3, 32, 128>}, {transform_indices = @transform_1, window_bounds = array<i64: 4, 3>}, {transform_indices = @transform_2, window_bounds = array<i64: 4>}, {transform_indices = @transform_3, window_bounds = array<i64: 1, 4, 32, 128>}]} {
    %c0 = arith.constant 0 : index
    %c0_0 = arith.constant 0 : index
    %c0_1 = arith.constant 0 : index
    %c0_2 = arith.constant 0 : index
    %0 = vector.load %arg2[%c0, %c0_0, %c0_1, %c0_2] : memref<1x3x32x128xf32, #tpu.memory_space<vmem>>, vector<1x1x32x128xf32>
    %1 = vector.shape_cast %0 : vector<1x1x32x128xf32> to vector<32x128xf32>
    %c0_3 = arith.constant 0 : index
    %c1 = arith.constant 1 : index
    %c0_4 = arith.constant 0 : index
    %c0_5 = arith.constant 0 : index
    %2 = vector.load %arg2[%c0_3, %c1, %c0_4, %c0_5] : memref<1x3x32x128xf32, #tpu.memory_space<vmem>>, vector<1x1x32x128xf32>
    %3 = vector.shape_cast %2 : vector<1x1x32x128xf32> to vector<32x128xf32>
    %c0_6 = arith.constant 0 : index
    %c2 = arith.constant 2 : index
    %c0_7 = arith.constant 0 : index
    %c0_8 = arith.constant 0 : index
    %4 = vector.load %arg2[%c0_6, %c2, %c0_7, %c0_8] : memref<1x3x32x128xf32, #tpu.memory_space<vmem>>, vector<1x1x32x128xf32>
    %5 = vector.shape_cast %4 : vector<1x1x32x128xf32> to vector<32x128xf32>
    %c0_9 = arith.constant 0 : index
    %c0_10 = arith.constant 0 : index
    %6 = memref.load %arg3[%c0_9, %c0_10] : memref<4x3xf32, #tpu.memory_space<smem>>
    %7 = vector.broadcast %6 : f32 to vector<32x128xf32>
    %8 = arith.mulf %1, %7 : vector<32x128xf32>
    %c0_11 = arith.constant 0 : index
    %c1_12 = arith.constant 1 : index
    %9 = memref.load %arg3[%c0_11, %c1_12] : memref<4x3xf32, #tpu.memory_space<smem>>
    %10 = vector.broadcast %9 : f32 to vector<32x128xf32>
    %11 = arith.mulf %3, %10 : vector<32x128xf32>
    %12 = arith.addf %8, %11 : vector<32x128xf32>
    %c0_13 = arith.constant 0 : index
    %c2_14 = arith.constant 2 : index
    %13 = memref.load %arg3[%c0_13, %c2_14] : memref<4x3xf32, #tpu.memory_space<smem>>
    %14 = vector.broadcast %13 : f32 to vector<32x128xf32>
    %15 = arith.mulf %5, %14 : vector<32x128xf32>
    %16 = arith.addf %12, %15 : vector<32x128xf32>
    %c0_15 = arith.constant 0 : index
    %17 = memref.load %arg4[%c0_15] : memref<4xf32, #tpu.memory_space<smem>>
    %18 = vector.broadcast %17 : f32 to vector<32x128xf32>
    %19 = arith.addf %16, %18 : vector<32x128xf32>
    %20 = math.tanh %19 : vector<32x128xf32>
    %c0_16 = arith.constant 0 : index
    %c0_17 = arith.constant 0 : index
    %c0_18 = arith.constant 0 : index
    %c0_19 = arith.constant 0 : index
    %21 = vector.load %arg5[%c0_16, %c0_17, %c0_18, %c0_19] : memref<1x4x32x128xf32, #tpu.memory_space<vmem>>, vector<1x1x32x128xf32>
    %22 = vector.shape_cast %21 : vector<1x1x32x128xf32> to vector<32x128xf32>
    %23 = vector.shape_cast %20 : vector<32x128xf32> to vector<1x1x32x128xf32>
    tpu.vector_store %arg5[%c0_16, %c0_17, %c0_18, %c0_19], %23 {strides = array<i32>} : memref<1x4x32x128xf32, #tpu.memory_space<vmem>>, vector<1x1x32x128xf32>,
    %c1_20 = arith.constant 1 : index
    %c0_21 = arith.constant 0 : index
    %24 = memref.load %arg3[%c1_20, %c0_21] : memref<4x3xf32, #tpu.memory_space<smem>>
    %25 = vector.broadcast %24 : f32 to vector<32x128xf32>
    %26 = arith.mulf %1, %25 : vector<32x128xf32>
    %c1_22 = arith.constant 1 : index
    %c1_23 = arith.constant 1 : index
    %27 = memref.load %arg3[%c1_22, %c1_23] : memref<4x3xf32, #tpu.memory_space<smem>>
    %28 = vector.broadcast %27 : f32 to vector<32x128xf32>
    %29 = arith.mulf %3, %28 : vector<32x128xf32>
    %30 = arith.addf %26, %29 : vector<32x128xf32>
    %c1_24 = arith.constant 1 : index
    %c2_25 = arith.constant 2 : index
    %31 = memref.load %arg3[%c1_24, %c2_25] : memref<4x3xf32, #tpu.memory_space<smem>>
    %32 = vector.broadcast %31 : f32 to vector<32x128xf32>
    %33 = arith.mulf %5, %32 : vector<32x128xf32>
    %34 = arith.addf %30, %33 : vector<32x128xf32>
    %c1_26 = arith.constant 1 : index
    %35 = memref.load %arg4[%c1_26] : memref<4xf32, #tpu.memory_space<smem>>
    %36 = vector.broadcast %35 : f32 to vector<32x128xf32>
    %37 = arith.addf %34, %36 : vector<32x128xf32>
    %38 = math.tanh %37 : vector<32x128xf32>
    %c0_27 = arith.constant 0 : index
    %c1_28 = arith.constant 1 : index
    %c0_29 = arith.constant 0 : index
    %c0_30 = arith.constant 0 : index
    %39 = vector.load %arg5[%c0_27, %c1_28, %c0_29, %c0_30] : memref<1x4x32x128xf32, #tpu.memory_space<vmem>>, vector<1x1x32x128xf32>
    %40 = vector.shape_cast %39 : vector<1x1x32x128xf32> to vector<32x128xf32>
    %41 = vector.shape_cast %38 : vector<32x128xf32> to vector<1x1x32x128xf32>
    tpu.vector_store %arg5[%c0_27, %c1_28, %c0_29, %c0_30], %41 {strides = array<i32>} : memref<1x4x32x128xf32, #tpu.memory_space<vmem>>, vector<1x1x32x128xf32>,
    %c2_31 = arith.constant 2 : index
    %c0_32 = arith.constant 0 : index
    %42 = memref.load %arg3[%c2_31, %c0_32] : memref<4x3xf32, #tpu.memory_space<smem>>
    %43 = vector.broadcast %42 : f32 to vector<32x128xf32>
    %44 = arith.mulf %1, %43 : vector<32x128xf32>
    %c2_33 = arith.constant 2 : index
    %c1_34 = arith.constant 1 : index
    %45 = memref.load %arg3[%c2_33, %c1_34] : memref<4x3xf32, #tpu.memory_space<smem>>
    %46 = vector.broadcast %45 : f32 to vector<32x128xf32>
    %47 = arith.mulf %3, %46 : vector<32x128xf32>
    %48 = arith.addf %44, %47 : vector<32x128xf32>
    %c2_35 = arith.constant 2 : index
    %c2_36 = arith.constant 2 : index
    %49 = memref.load %arg3[%c2_35, %c2_36] : memref<4x3xf32, #tpu.memory_space<smem>>
    %50 = vector.broadcast %49 : f32 to vector<32x128xf32>
    %51 = arith.mulf %5, %50 : vector<32x128xf32>
    %52 = arith.addf %48, %51 : vector<32x128xf32>
    %c2_37 = arith.constant 2 : index
    %53 = memref.load %arg4[%c2_37] : memref<4xf32, #tpu.memory_space<smem>>
    %54 = vector.broadcast %53 : f32 to vector<32x128xf32>
    %55 = arith.addf %52, %54 : vector<32x128xf32>
    %56 = math.tanh %55 : vector<32x128xf32>
    %c0_38 = arith.constant 0 : index
    %c2_39 = arith.constant 2 : index
    %c0_40 = arith.constant 0 : index
    %c0_41 = arith.constant 0 : index
    %57 = vector.load %arg5[%c0_38, %c2_39, %c0_40, %c0_41] : memref<1x4x32x128xf32, #tpu.memory_space<vmem>>, vector<1x1x32x128xf32>
    %58 = vector.shape_cast %57 : vector<1x1x32x128xf32> to vector<32x128xf32>
    %59 = vector.shape_cast %56 : vector<32x128xf32> to vector<1x1x32x128xf32>
    tpu.vector_store %arg5[%c0_38, %c2_39, %c0_40, %c0_41], %59 {strides = array<i32>} : memref<1x4x32x128xf32, #tpu.memory_space<vmem>>, vector<1x1x32x128xf32>,
    %c3 = arith.constant 3 : index
    %c0_42 = arith.constant 0 : index
    %60 = memref.load %arg3[%c3, %c0_42] : memref<4x3xf32, #tpu.memory_space<smem>>
    %61 = vector.broadcast %60 : f32 to vector<32x128xf32>
    %62 = arith.mulf %1, %61 : vector<32x128xf32>
    %c3_43 = arith.constant 3 : index
    %c1_44 = arith.constant 1 : index
    %63 = memref.load %arg3[%c3_43, %c1_44] : memref<4x3xf32, #tpu.memory_space<smem>>
    %64 = vector.broadcast %63 : f32 to vector<32x128xf32>
    %65 = arith.mulf %3, %64 : vector<32x128xf32>
    %66 = arith.addf %62, %65 : vector<32x128xf32>
    %c3_45 = arith.constant 3 : index
    %c2_46 = arith.constant 2 : index
    %67 = memref.load %arg3[%c3_45, %c2_46] : memref<4x3xf32, #tpu.memory_space<smem>>
    %68 = vector.broadcast %67 : f32 to vector<32x128xf32>
    %69 = arith.mulf %5, %68 : vector<32x128xf32>
    %70 = arith.addf %66, %69 : vector<32x128xf32>
    %c3_47 = arith.constant 3 : index
    %71 = memref.load %arg4[%c3_47] : memref<4xf32, #tpu.memory_space<smem>>
    %72 = vector.broadcast %71 : f32 to vector<32x128xf32>
    %73 = arith.addf %70, %72 : vector<32x128xf32>
    %74 = math.tanh %73 : vector<32x128xf32>
    %c0_48 = arith.constant 0 : index
    %c3_49 = arith.constant 3 : index
    %c0_50 = arith.constant 0 : index
    %c0_51 = arith.constant 0 : index
    %75 = vector.load %arg5[%c0_48, %c3_49, %c0_50, %c0_51] : memref<1x4x32x128xf32, #tpu.memory_space<vmem>>, vector<1x1x32x128xf32>
    %76 = vector.shape_cast %75 : vector<1x1x32x128xf32> to vector<32x128xf32>
    %77 = vector.shape_cast %74 : vector<32x128xf32> to vector<1x1x32x128xf32>
    tpu.vector_store %arg5[%c0_48, %c3_49, %c0_50, %c0_51], %77 {strides = array<i32>} : memref<1x4x32x128xf32, #tpu.memory_space<vmem>>, vector<1x1x32x128xf32>,
    return
  }
  func.func @transform_0(%arg0: i32, %arg1: i32) -> (i32, i32, i32, i32) {
    %c0_i32 = arith.constant 0 : i32
    %c0_i32_0 = arith.constant 0 : i32
    %c0_i32_1 = arith.constant 0 : i32
    return %arg0, %c0_i32, %arg1, %c0_i32_0 : i32, i32, i32, i32
  }
  func.func @transform_1(%arg0: i32, %arg1: i32) -> (i32, i32) {
    %c0_i32 = arith.constant 0 : i32
    %c0_i32_0 = arith.constant 0 : i32
    %c0_i32_1 = arith.constant 0 : i32
    return %c0_i32, %c0_i32_0 : i32, i32
  }
  func.func @transform_2(%arg0: i32, %arg1: i32) -> i32 {
    %c0_i32 = arith.constant 0 : i32
    %c0_i32_0 = arith.constant 0 : i32
    return %c0_i32 : i32
  }
  func.func @transform_3(%arg0: i32, %arg1: i32) -> (i32, i32, i32, i32) {
    %c0_i32 = arith.constant 0 : i32
    %c0_i32_0 = arith.constant 0 : i32
    %c0_i32_1 = arith.constant 0 : i32
    return %arg0, %c0_i32, %arg1, %c0_i32_0 : i32, i32, i32, i32
  }
}

</mosaic_0001>

<bundles_post_ra>
// kernel: tpu_custom_call.1
= control target key start
LH: loop header
LB: loop body
LE: loop exit
PB: predicated region body
PF: predicated region fallthrough
CT: control target
= control target key end

     0   :  { %s1191_s0 = inlined_call_operand.hbm [shape: f32[2,3,32,128], index: 0, kind: input, shape index: {}]   ;;  %s1192_s1 = inlined_call_operand.hbm [shape: f32[4,3], index: 1, kind: input, shape index: {}]   ;;  %s1193_s2 = inlined_call_operand.vmem [shape: f32[4], index: 2, kind: input, shape index: {}]   ;;  %s1194_s3 = inlined_call_operand.hbm [shape: f32[2,4,32,128], index: 3, kind: output, shape index: {}]  }
   0x1   :  { %1195 = sst [smem:[#allocation14_spill]] %s1192_s1 }
   0x2   :  { %8 = vsyncpa [#allocation3], 0 }
   0x3   :  { %10 = vsyncpa [#allocation3 + $0x1], 0 }
   0x4   :  { %11 = vsyncpa [#allocation5], 0 }
   0x5   :  { %12 = vsyncpa [#allocation6], 0 }
   0x6   :  { %13 = vsyncpa [#allocation4], 0 }
   0x7   :  { %15 = vsyncpa [#allocation4 + $0x1], 0  ;;  %s895_s12 = smov 0   ;;  %s897_s13 = smov 0  }
   0x8   :  { %s899_s14 = smov 0   ;;  %s901_s15 = smov 0  }
   0x9   :  { %s903_s16 = smov 0   ;;  %s905_s17 = smov 0  }
   0xa LB: > { %s544_s18 = sadd.s32 4294967295, %s867_s17   ;;  %s545_s19 = sadd.s32 4294967294, %s867_s17   ;;  %s867_s17 = sphi %s905_s17, %s21_s17   ;;  %s863_s16 = sphi %s903_s16, %s1208_s16   ;;  %s859_s15 = sphi %s901_s15, %s1207_s15   ;;  %s855_s14 = sphi %s899_s14, %s1206_s14   ;;  %s851_s13 = sphi %s897_s13, %s1205_s13   ;;  %s847_s12 = sphi %s895_s12, %s1204_s12  }
   0xb   : > { %s42_s20 = sadd.s32 1, %s855_s14  ;;  %p49_p0 = scmp.ne.s32.totalorder %s855_s14, %s851_s13 }
   0xc   : > { %p50_p1 = scmp.eq.s32.totalorder %s867_s17, 0  ;;  %p55_p2 = scmp.ne.s32.totalorder %s851_s13, %s847_s12 }
   0xd   : > { %p933_p3 = scmp.eq.s32.totalorder %s544_s18, 0  ;;  %p123_p4 = scmp.eq.s32.totalorder %s544_s18, 1 }
   0xe   : > { %p937_p5 = por %p50_p1, %p49_p0  ;;  %p129_p6 = scmp.eq.s32.totalorder %s545_s19, 1 }
   0xf   : > { %p943_p7 = por %p933_p3, %p55_p2  ;;  %p947_p8 = por %p123_p4, %p49_p0 }
  0x10   : > { %p951_p9 = por %p129_p6, %p55_p2  ;;  %p546_p10 = scmp.ge.s32.totalorder %s867_s17, 1 }
  0x11   : > { %p136_p11 = scmp.lt.s32.totalorder %s867_s17, 3  ;;  %s1201_s1 = sld [smem:[#allocation14_spill]] }
  0x12   : > { %p549_p13 = scmp.ge.s32.totalorder %s867_s17, 2  ;;  %p627_p0 = scmp.lt.s32.totalorder %s867_s17, 2 }
  0x13   : > { %p960_p12 = pnand %p546_p10, %p136_p11  ;;  %s158_s5 = sshll.u32 %s1193_s2, 4  ;;  %s159_s5 = int_to_ptr.vmem [resolvable:$true] %s158_s5 }
  0x14   : > { %p973_p2 = pnand %p627_p0, %p937_p5  ;;  %s869_s7 = smov [#allocation7]  }
  0x15   : > { %p610_p1 = pneg %p960_p12  ;;  %s870_s8 = smov [#allocation8]  }
  0x16   : > { %s33_s9 = sadd.s32 1, %s863_s16  ;;  %s169_s10 = sand.u32 1, %s855_s14  }
  0x17   : > { %s148_s28 = sshll.u32 %s1201_s1, 4  ;;  %p611_p4 = pnand %p610_p1, %p933_p3  ;;  %s149_s28 = int_to_ptr.hbm [resolvable:$true] %s148_s28 }
  0x18   : > { %p35_p6 = scmp.ge.s32.totalorder %s33_s9, 2  ;;  %s595_s11 = smul.u32 96, %s169_s10 }
  0x19   : > { %613 = dma.hbm_to_smem (!%p611_p4), %s149_s28, 64, %s869_s7, [#allocation5]  }
  0x1a   : > { %616 = dma.vmem_to_smem (!%p611_p4), %s159_s5, 16, %s870_s8, [#allocation6]  }
  0x1b   : > { %s1210_s9 = smov (%p35_p6, %s33_s9), 0  ;;  %s596_s18 = smul.u32 96, %s863_s16 }
  0x1c   : > { %s37_s19 = ssub.s32 %s863_s16, %s1210_s9  ;;  %s173_s22 = scalar_lea.vmem [#allocation2], %s595_s11 }
  0x1d   : > { %s183_s26 = sshll.u32 %s173_s22, 4  ;;  %p40_p5 = scmp.eq.s32.totalorder %s37_s19, 0  ;;  %s184_s26 = int_to_ptr.vmem [resolvable:$true] %s183_s26 }
  0x1e   : > { %s180_s28 = scalar_lea.hbm %s1191_s0, %s596_s18  ;;  %s170_s7 = scalar_lea.sflag [#allocation3], %s169_s10 }
  0x1f   : > { %s181_s4 = sshll.u32 %s180_s28, 4  ;;  %s871_s8 = smov 128   ;;  %s182_s4 = int_to_ptr.hbm [resolvable:$true] %s181_s4 }
  0x20   : > { %s992_s5 = scalar_select %p40_p5, %s855_s14, %s42_s20  }
  0x21   : > { %s872_s1 = smov 8   ;;  %195 = sbr.rel (%p960_p12) target bundleno = 100 (0x64), region = 32 }
  0x22   : > { %620 = dma.hbm_to_vmem [thread:$0]  (!%p973_p2), %s182_s4, 1536, %s184_s26, %s170_s7, %s871_s8, %s871_s8, %s872_s1  }
  0x23   : > { %s999_s11 = sand.u32 (!%p960_p12), 1, %s851_s13  }
  0x24   : > { %s597_s18 = smul.u32 (!%p960_p12), 96, %s999_s11  ;;  %s198_s19 = scalar_lea.sflag (!%p960_p12), [#allocation3], %s999_s11 }
  0x26   : > { %s1003_s22 = scalar_lea.vmem [#allocation2], %s597_s18 }
  0x27   : > { %830 = dma.done.wait (%p943_p7), %s198_s19, 1536  }
  0x28   : > { %832 = vsyncadd (%p943_p7), %s198_s19, 4294965760 }
  0x29   : > { %834 = dma.done.wait (%p933_p3), [#allocation5], 64  }
  0x2a   : > { %836 = vsyncadd (%p933_p3), [#allocation5], 4294967232 }
  0x2b   : > { %838 = dma.done.wait (%p933_p3), [#allocation6], 16  }
  0x2c   : > { %840 = vsyncadd (%p933_p3), [#allocation6], 4294967280 }
  0x2d   : > { %217 = sfence }
  0x2e   : > { %s252_s1 = sld [smem:[#allocation7]]  ;;  %v1018_v0 = vld [vmem:[%s1003_s22] sm:$0xff]  ;;  %v1021_v1 = vld [vmem:[%s1003_s22 + $0x8] sm:$0xff]  ;;  %v1024_v2 = vld [vmem:[%s1003_s22 + $0x10] sm:$0xff]  ;;  %s554_s7 = sshll.u32 %s999_s11, 7 }
  0x2f   : > { %s563_s20 = sld [smem:[#allocation7 + $0x1]]  ;;  %v1029_v3 = vld [vmem:[%s1003_s22 + $0x20] sm:$0xff]  ;;  %v1032_v4 = vld [vmem:[%s1003_s22 + $0x28] sm:$0xff]  ;;  %v1035_v5 = vld [vmem:[%s1003_s22 + $0x30] sm:$0xff] }
  0x30   : > { %s564_s23 = sld [smem:[#allocation7 + $0x2]]  ;;  %v1038_v6 = vld [vmem:[%s1003_s22 + $0x40] sm:$0xff]  ;;  %v1041_v8 = vld [vmem:[%s1003_s22 + $0x48] sm:$0xff]  ;;  %v1044_v9 = vld [vmem:[%s1003_s22 + $0x50] sm:$0xff] }
  0x31   : > { %s278_s29 = sld [smem:[#allocation8]]  ;;  %v1052_v14 = vld [vmem:[%s1003_s22 + $0x18] sm:$0xff] }
  0x32   : > { %s1026_s21 = sld [smem:[#allocation7 + $0x80]]  ;;  %v1058_v19 = vld [vmem:[%s1003_s22 + $0x38] sm:$0xff] }
  0x33   : > { %s566_s6 = sld [smem:[#allocation7 + $0x81]]  ;;  %v1061_v20 = vld [vmem:[%s1003_s22 + $0x58] sm:$0xff] }
  0x34   : > { %v253_v7 = vstv %s252_s1  ;;  %s1046_s10 = sld [smem:[#allocation7 + $0x82]]  ;;  %s1108_s1 = scalar_lea.vmem [#allocation9], %s554_s7 }
  0x35   : > { %v254_v10 = vmul.f32 %v253_v7, %v1018_v0  ;;  %v259_v11 = vstv %s563_s20  ;;  %v255_v12 = vmul.f32 %v253_v7, %v1021_v1  ;;  %v256_v13 = vmul.f32 %v253_v7, %v1024_v2  ;;  %s568_s26 = sld [smem:[#allocation8 + $0x1]]  ;;  %s594_s20 = sshll.u32 %s859_s15, 7 }
  0x36   : > { %v260_v15 = vmul.f32 %v1029_v3, %v259_v11  ;;  %v269_v16 = vstv %s564_s23  ;;  %v261_v17 = vmul.f32 %v1032_v4, %v259_v11  ;;  %v262_v18 = vmul.f32 %v1035_v5, %v259_v11  ;;  %s1070_s27 = sld [smem:[#allocation7 + $0x100]]  ;;  %s430_s15 = sshll.u32 %s1108_s1, 4  ;;  %s431_s15 = int_to_ptr.vmem [resolvable:$true] %s430_s15 }
  0x37   : > { %v270_v21 = vmul.f32 %v1038_v6, %v269_v16  ;;  %v279_v22 = vstv %s278_s29  ;;  %v271_v23 = vmul.f32 %v1041_v8, %v269_v16  ;;  %v272_v24 = vmul.f32 %v1044_v9, %v269_v16  ;;  %s1073_s30 = sld [smem:[#allocation7 + $0x101]] }
  0x38   : > { %v264_v25 = vadd.f32 %v260_v15, %v254_v10  ;;  %v265_v26 = vadd.f32 %v261_v17, %v255_v12  ;;  %v266_v27 = vadd.f32 %v262_v18, %v256_v13  ;;  %v257_v28 = vmul.f32 %v253_v7, %v1052_v14  ;;  %s1077_s28 = sld [smem:[#allocation7 + $0x102]] }
  0x39   : > { %v263_v29 = vmul.f32 %v1058_v19, %v259_v11  ;;  %v273_v30 = vmul.f32 %v1061_v20, %v269_v16  ;;  %v293_v31 = vstv %s1026_s21  ;;  %v299_v32 = vstv %s566_s6  ;;  %s1080_s4 = sld [smem:[#allocation8 + $0x2]]  ;;  %s429_s21 = scalar_lea.hbm %s1194_s3, %s594_s20 }
  0x3a   : > { %v274_v33 = vadd.f32 %v270_v21, %v264_v25  ;;  %v275_v34 = vadd.f32 %v271_v23, %v265_v26  ;;  %v276_v35 = vadd.f32 %v272_v24, %v266_v27  ;;  %v294_v36 = vmul.f32 %v293_v31, %v1018_v0  ;;  %s1090_s8 = sld [smem:[#allocation7 + $0x180]]  ;;  %s432_s6 = sshll.u32 %s429_s21, 4  ;;  %s433_s6 = int_to_ptr.hbm [resolvable:$true] %s432_s6 }
  0x3b   : > { %v267_v37 = vadd.f32 %v263_v29, %v257_v28  ;;  %v300_v38 = vmul.f32 %v1029_v3, %v299_v32  ;;  %v309_v39 = vstv %s1046_s10  ;;  %v319_v40 = vstv %s568_s26  ;;  %s1093_s18 = sld [smem:[#allocation7 + $0x181]]  ;;  %s416_s10 = scalar_lea.sflag [#allocation4], %s999_s11 }
  0x3c   : > { %v280_v41 = vadd.f32 %v279_v22, %v274_v33  ;;  %v281_v42 = vadd.f32 %v279_v22, %v275_v34  ;;  %v282_v43 = vadd.f32 %v279_v22, %v276_v35  ;;  %v310_v44 = vmul.f32 %v1038_v6, %v309_v39  ;;  %s1098_s19 = sld [smem:[#allocation7 + $0x182]]  ;;  %s791_s26 = sshra.s32 %s433_s6, 4  ;;  %s792_s26 = int_to_ptr.hbm [resolvable:$true] %s791_s26 }
  0x3d   : > { %v277_v45 = vadd.f32 %v273_v30, %v267_v37  ;;  %v304_v46 = vadd.f32 %v300_v38, %v294_v36  ;;  %v295_v47 = vmul.f32 %v293_v31, %v1021_v1  ;;  %v301_v48 = vmul.f32 %v1032_v4, %v299_v32  ;;  %s1101_s22 = sld [smem:[#allocation8 + $0x3]]  ;;  %p798_p11 = scmp.lt.s32.totalorder %s792_s26, %s1194_s3 }
  0x3e   : > { %685 = vtanh.f32 %v280_v41  ;;  %v311_v49 = vmul.f32 %v1041_v8, %v309_v39  ;;  %v296_v50 = vmul.f32 %v293_v31, %v1024_v2  ;;  %v302_v51 = vmul.f32 %v1035_v5, %v299_v32 }
  0x3f   : > { %687 = vtanh.f32 %v281_v42  ;;  %v283_v52 = vadd.f32 %v279_v22, %v277_v45  ;;  %v314_v53 = vadd.f32 %v310_v44, %v304_v46  ;;  %v305_v54 = vadd.f32 %v301_v48, %v295_v47 }
  0x40   : > { %689 = vtanh.f32 %v282_v43  ;;  %v306_v55 = vadd.f32 %v302_v51, %v296_v50  ;;  %v312_v56 = vmul.f32 %v1044_v9, %v309_v39  ;;  %v297_v57 = vmul.f32 %v293_v31, %v1052_v14 }
  0x41   : > { %691 = vtanh.f32 %v283_v52  ;;  %v320_v58 = vadd.f32 %v319_v40, %v314_v53  ;;  %v315_v59 = vadd.f32 %v311_v49, %v305_v54  ;;  %v303_v60 = vmul.f32 %v1058_v19, %v299_v32 }
  0x42   : > { %v316_v61 = vadd.f32 %v312_v56, %v306_v55  ;;  %v313_v62 = vmul.f32 %v1061_v20, %v309_v39  ;;  %v334_v63 = vstv %s1070_s27  ;;  %v340_v7 = vstv %s1073_s30  ;;  %s793_s27 = scalar_lea.hbm %s792_s26, 128 }
  0x43   : > { %693 = vtanh.f32 %v320_v58  ;;  %v321_v10 = vadd.f32 %v319_v40, %v315_v59  ;;  %v307_v11 = vadd.f32 %v303_v60, %v297_v57  ;;  %v335_v12 = vmul.f32 %v334_v63, %v1018_v0  ;;  %p794_p3 = scmp.ne.s32.totalorder %s792_s26, %s793_s27 }
  0x44   : > { %v686_v13 = vpop.eup %685  ;;  %v322_v15 = vadd.f32 %v319_v40, %v316_v61  ;;  %v341_v16 = vmul.f32 %v1029_v3, %v340_v7  ;;  %v350_v17 = vstv %s1077_s28  ;;  %v360_v18 = vstv %s1080_s4  ;;  %s797_s4 = scalar_lea.hbm %s1194_s3, 256 }
  0x45   : > { %v688_v21 = vpop.eup %687  ;;  %288 = vst [vmem:[%s1108_s1] sm:$0xff] %v686_v13  ;;  %695 = vtanh.f32 %v321_v10  ;;  %v317_v22 = vadd.f32 %v313_v62, %v307_v11  ;;  %v351_v23 = vmul.f32 %v1038_v6, %v350_v17  ;;  %v336_v24 = vmul.f32 %v334_v63, %v1021_v1  ;;  %p795_p7 = pnand %p794_p3, %p947_p8  ;;  %p799_p12 = scmp.lt.s32.totalorder %s797_s4, %s793_s27 }
  0x46   : > { %v690_v25 = vpop.eup %689  ;;  %289 = vst [vmem:[%s1108_s1 + $0x8] sm:$0xff] %v688_v21  ;;  %697 = vtanh.f32 %v322_v15  ;;  %v345_v26 = vadd.f32 %v341_v16, %v335_v12  ;;  %v342_v27 = vmul.f32 %v1032_v4, %v340_v7  ;;  %v352_v28 = vmul.f32 %v1041_v8, %v350_v17 }
  0x47   : > { %v692_v29 = vpop.eup %691  ;;  %290 = vst [vmem:[%s1108_s1 + $0x10] sm:$0xff] %v690_v25  ;;  %v323_v30 = vadd.f32 %v319_v40, %v317_v22  ;;  %v337_v31 = vmul.f32 %v334_v63, %v1024_v2  ;;  %v343_v32 = vmul.f32 %v1035_v5, %v340_v7  ;;  %v353_v33 = vmul.f32 %v1044_v9, %v350_v17  ;;  %p796_p10 = pneg %p795_p7  ;;  %p800_p0 = por %p799_p12, %p798_p11 }
  0x48   : > { %291 = vst [vmem:[%s1108_s1 + $0x18] sm:$0xff] %v692_v29  ;;  %v355_v34 = vadd.f32 %v351_v23, %v345_v26  ;;  %v346_v35 = vadd.f32 %v342_v27, %v336_v24  ;;  %v338_v36 = vmul.f32 %v334_v63, %v1052_v14  ;;  %v344_v37 = vmul.f32 %v1058_v19, %v340_v7 }
  0x49   : > { %v694_v38 = vpop.eup %693  ;;  %699 = vtanh.f32 %v323_v30  ;;  %v347_v39 = vadd.f32 %v343_v32, %v337_v31  ;;  %v354_v40 = vmul.f32 %v1061_v20, %v350_v17  ;;  %v375_v41 = vstv %s1090_s8  ;;  %p801_p1 = pnand %p800_p0, %p796_p10 }
  0x4a   : > { %569 = vst [vmem:[%s1108_s1 + $0x20] sm:$0xff] %v694_v38  ;;  %v361_v42 = vadd.f32 %v360_v18, %v355_v34  ;;  %v356_v43 = vadd.f32 %v352_v28, %v346_v35  ;;  %v348_v44 = vadd.f32 %v344_v37, %v338_v36  ;;  %v376_v45 = vmul.f32 %v375_v41, %v1018_v0 }
  0x4b   : > { %v696_v46 = vpop.eup %695  ;;  %v357_v47 = vadd.f32 %v353_v33, %v347_v39  ;;  %v381_v48 = vstv %s1093_s18  ;;  %v391_v49 = vstv %s1098_s19  ;;  %v401_v50 = vstv %s1101_s22 }
  0x4c   : > { %v698_v51 = vpop.eup %697  ;;  %570 = vst [vmem:[%s1108_s1 + $0x28] sm:$0xff] %v696_v46  ;;  %701 = vtanh.f32 %v361_v42  ;;  %v362_v52 = vadd.f32 %v360_v18, %v356_v43  ;;  %v358_v53 = vadd.f32 %v354_v40, %v348_v44  ;;  %v382_v54 = vmul.f32 %v1029_v3, %v381_v48 }
  0x4d   : > { %571 = vst [vmem:[%s1108_s1 + $0x30] sm:$0xff] %v698_v51  ;;  %v363_v55 = vadd.f32 %v360_v18, %v357_v47  ;;  %v392_v56 = vmul.f32 %v1038_v6, %v391_v49  ;;  %v377_v57 = vmul.f32 %v375_v41, %v1021_v1  ;;  %v383_v0 = vmul.f32 %v1032_v4, %v381_v48 }
  0x4e   : > { %703 = vtanh.f32 %v362_v52  ;;  %v364_v58 = vadd.f32 %v360_v18, %v358_v53  ;;  %v386_v59 = vadd.f32 %v382_v54, %v376_v45  ;;  %v393_v60 = vmul.f32 %v1041_v8, %v391_v49 }
  0x4f   : > { %v700_v61 = vpop.eup %699  ;;  %705 = vtanh.f32 %v363_v55  ;;  %v387_v62 = vadd.f32 %v383_v0, %v377_v57  ;;  %v378_v63 = vmul.f32 %v375_v41, %v1024_v2  ;;  %v384_v3 = vmul.f32 %v1035_v5, %v381_v48 }
  0x50   : > { %572 = vst [vmem:[%s1108_s1 + $0x38] sm:$0xff] %v700_v61  ;;  %707 = vtanh.f32 %v364_v58  ;;  %v396_v6 = vadd.f32 %v392_v56, %v386_v59  ;;  %v394_v1 = vmul.f32 %v1044_v9, %v391_v49  ;;  %v379_v4 = vmul.f32 %v375_v41, %v1052_v14 }
  0x51   : > { %v397_v7 = vadd.f32 %v393_v60, %v387_v62  ;;  %v388_v10 = vadd.f32 %v384_v3, %v378_v63  ;;  %v385_v8 = vmul.f32 %v1058_v19, %v381_v48  ;;  %v395_v11 = vmul.f32 %v1061_v20, %v391_v49 }
  0x52   : > { %v702_v12 = vpop.eup %701  ;;  %v402_v2 = vadd.f32 %v401_v50, %v396_v6 }
  0x53   : > { %577 = vst [vmem:[%s1108_s1 + $0x40] sm:$0xff] %v702_v12  ;;  %v403_v5 = vadd.f32 %v401_v50, %v397_v7  ;;  %v398_v13 = vadd.f32 %v394_v1, %v388_v10  ;;  %v389_v15 = vadd.f32 %v385_v8, %v379_v4 }
  0x54   : > { %v704_v16 = vpop.eup %703  ;;  %709 = vtanh.f32 %v402_v2 }
  0x55   : > { %v706_v9 = vpop.eup %705  ;;  %578 = vst [vmem:[%s1108_s1 + $0x48] sm:$0xff] %v704_v16  ;;  %711 = vtanh.f32 %v403_v5  ;;  %v404_v14 = vadd.f32 %v401_v50, %v398_v13  ;;  %v399_v19 = vadd.f32 %v395_v11, %v389_v15 }
  0x56   : > { %v708_v20 = vpop.eup %707  ;;  %579 = vst [vmem:[%s1108_s1 + $0x50] sm:$0xff] %v706_v9 }
  0x57   : > { %580 = vst [vmem:[%s1108_s1 + $0x58] sm:$0xff] %v708_v20  ;;  %713 = vtanh.f32 %v404_v14  ;;  %v405_v17 = vadd.f32 %v401_v50, %v399_v19 }
  0x59   : > { %715 = vtanh.f32 %v405_v17 }
  0x5a   : > { %v710_v18 = vpop.eup %709 }
  0x5b   : > { %v712_v21 = vpop.eup %711  ;;  %585 = vst [vmem:[%s1108_s1 + $0x60] sm:$0xff] %v710_v18 }
  0x5c   : > { %586 = vst [vmem:[%s1108_s1 + $0x68] sm:$0xff] %v712_v21 }
  0x5d   : > { %v714_v22 = vpop.eup %713 }
  0x5e   : > { %587 = vst [vmem:[%s1108_s1 + $0x70] sm:$0xff] %v714_v22 }
  0x5f   : > { %v716_v23 = vpop.eup %715 }
  0x60   : > { %588 = vst [vmem:[%s1108_s1 + $0x78] sm:$0xff] %v716_v23 }
  0x61   : > { %804 = shalt.err (!%p801_p1)
}
  0x62   : > { %s873_s11 = smov 128   ;;  %s874_s18 = smov 8  }
  0x63   : > { %608 = dma.vmem_to_hbm [thread:$0]  (%p947_p8), %s431_s15, 2048, %s433_s6, %s416_s10, %s873_s11, %s873_s11, %s874_s18  }
  0x64 PF: > { %s447_s19 = sand.u32 1, %s847_s12   ;;  %p622_p2 = pnand %p549_p13, %p951_p9 }
  0x65   : > { %s448_s22 = scalar_lea.sflag [#allocation4], %s447_s19 }
  0x66   : > { %p623_p4 = pneg %p622_p2 }
  0x68   : > { %842 = dma.done.wait (%p623_p4), %s448_s22, 2048  }
  0x69   : > { %844 = vsyncadd (%p623_p4), %s448_s22, 4294965248  ;;  %s21_s17 = sadd.s32 1, %s867_s17   ;;  %s1204_s12 = smov %s851_s13 }
  0x6a   : > { %p18_p6 = scmp.ge.s32.totalorder %s21_s17, 4   ;;  %s1205_s13 = smov %s855_s14 }
  0x6b   : > { %s1206_s14 = smov %s992_s5  ;;  %s1207_s15 = smov %s863_s16 }
  0x6c   : > { %s1208_s16 = smov %s1210_s9  ;;  %20 = sbr.rel (!%p18_p6) target bundleno = 10 (0xa), region = 92 }
  0x71   :  { %454 = vsyncpa [#allocation3], 1 }
  0x72   :  { %456 = vsyncpa [#allocation3 + $0x1], 1 }
  0x73   :  { %457 = vsyncpa [#allocation4], 1 }
  0x74   :  { %459 = vsyncpa [#allocation4 + $0x1], 1 }
  0x75   :  { %460 = vsyncpa [#allocation5], 1 }
  0x76   :  { %462 = vsyncpa [#allocation5 + $0x1], 1 }
  0x77   :  { %463 = vsyncpa [#allocation6], 1 }
  0x78   :  { %465 = vsyncpa [#allocation6 + $0x1], 1 }

</bundles_post_ra>
